<compile_context>
chip_gen: v7x
topology: tpu7x:2x2x1
jax: 0.10.0
libtpu: 0.0.40
codegen_flags: <defaults>
</compile_context>

<pallas_src>
import functools

import jax
import jax.numpy as jnp
from jax.experimental import pallas as pl
from jax.experimental.pallas import tpu as pltpu

_EPS = 1e-5


def _full_spec(shape):
    # Whole-array block (block_shape == array shape satisfies TPU tiling rules).
    return pl.BlockSpec(shape, lambda i: (0,) * len(shape))


def _make_fused_residual_kernel(N, H, W, Cin, Cout, use_1x1conv):
    R = N * H
    WCout = W * Cout
    inv_n = 1.0 / float(N * H * W)

    def kernel(x_ref, k1c_ref, k1s_ref, k2c_ref, k2s_ref, s_ref, t_ref,
               g1_ref, be1_ref, g2_ref, be2_ref, *rest):
        if use_1x1conv:
            b3_ref, o_ref = rest
        else:
            (o_ref,) = rest

        dot = lambda a, b: jnp.dot(a, b, preferred_element_type=jnp.float32)
        x = x_ref[...]

        def band_conv(slab, kc_ref, ks_ref):
            # dh=0 band (possibly widened with the fused 1x1 shortcut columns),
            # dh=+/-1 bands routed through the per-image row-shift matrices.
            u0 = dot(slab, kc_ref[...])
            ush = (dot(s_ref[0], dot(slab, ks_ref[0])) +
                   dot(s_ref[1], dot(slab, ks_ref[1])))
            return u0, ush

        def bn(a, g_ref, be_ref):
            # Training-mode BN over (N, H, W) in the (N*H, W*Cout) layout.
            s = jnp.sum(a, axis=0, keepdims=True)           # per-(w, c) sums
            q = jnp.sum(a * a, axis=0, keepdims=True)
            mean = dot(s, t_ref[...]) * inv_n                # per-c, tiled per w
            ex2 = dot(q, t_ref[...]) * inv_n
            var = jnp.maximum(ex2 - mean * mean, 0.0)        # cancellation guard
            scale = g_ref[...] * jax.lax.rsqrt(var + _EPS)
            shift = be_ref[...] - mean * scale
            return a * scale + shift

        # ---- conv1 (+ fused 1x1 projection shortcut) ----
        u0, ush = band_conv(x, k1c_ref, k1s_ref)
        if use_1x1conv:
            a1 = ush + u0[:, :WCout]
            shortcut = u0[:, WCout:] + b3_ref[...]
        else:
            a1 = ush + u0
            shortcut = x                                     # requires Cin == Cout

        # ---- BN1 + ReLU (intermediate never leaves VMEM) ----
        y = jnp.maximum(bn(a1, g1_ref, be1_ref), 0.0)

        # ---- conv2 + BN2 ----
        u0b, ushb = band_conv(y, k2c_ref, k2s_ref)
        y2 = bn(u0b + ushb, g2_ref, be2_ref)

        # ---- residual add + final ReLU, lane-dense store ----
        o_ref[...] = jnp.maximum(y2 + shortcut, 0.0)

    return kernel


def _band_weight(w_hwio, dh, W):
    """Block-tridiagonal (W*Ci, W*Co) weight applying the three dw taps of row
    offset dh; missing off-diagonal blocks at w=0 / w=W-1 implement pad=1."""
    k = None
    for dw in (-1, 0, 1):
        blk = jnp.kron(jnp.eye(W, k=-dw, dtype=jnp.float32),
                       w_hwio[dh + 1, dw + 1].astype(jnp.float32))
        k = blk if k is None else k + blk
    return k


def _row_shift(N, H, dh):
    """(N*H, N*H) per-image row shift-and-mask matrix for row offset dh."""
    return jnp.kron(jnp.eye(N, dtype=jnp.float32),
                    jnp.eye(H, k=dh, dtype=jnp.float32))


@functools.partial(jax.jit, static_argnames=("use_1x1conv", "strides"))
def restidual_forward(x_nchw, params, use_1x1conv=False, strides=1):
    """Forward pass of the Restidual module.  Input/output are NCHW float32."""
    if strides != 1:
        # TODO(synk): strides>1 (downsampling) path not implemented in-kernel.
        raise NotImplementedError("only strides=1 is implemented")

    N, Cin, H, W = x_nchw.shape
    Cout = params["w1"].shape[-1]
    if not use_1x1conv:
        assert Cin == Cout, "identity shortcut requires input_channels == num_channels"

    R, L1, WCout = N * H, W * Cin, W * Cout
    f32 = jnp.float32

    # Lane-dense input slab: (N*H, W*Cin).
    x = jnp.transpose(x_nchw, (0, 2, 3, 1)).astype(f32).reshape(R, L1)

    w1 = params["w1"].astype(f32)                    # (3,3,Cin,Cout) HWIO
    w2 = params["w2"].astype(f32)                    # (3,3,Cout,Cout)

    k1c = _band_weight(w1, 0, W)                     # (W*Cin, W*Cout)
    if use_1x1conv:
        w3 = params["w3"].astype(f32).reshape(Cin, Cout)
        # Fuse the 1x1 projection into the dh=0 conv1 matmul (extra columns).
        k1c = jnp.concatenate([k1c, jnp.kron(jnp.eye(W, dtype=f32), w3)], axis=1)
    k1s = jnp.stack([_band_weight(w1, dh, W) for dh in (-1, 1)])
    k2c = _band_weight(w2, 0, W)
    k2s = jnp.stack([_band_weight(w2, dh, W) for dh in (-1, 1)])
    s_mats = jnp.stack([_row_shift(N, H, dh) for dh in (-1, 1)])
    # Per-channel reduce + re-broadcast over the W lane groups, as one matmul.
    t_mat = jnp.kron(jnp.ones((W, W), f32), jnp.eye(Cout, dtype=f32))

    tile = lambda v: jnp.tile(v.reshape(1, -1).astype(f32), (1, W))   # (1, W*Cout)

    # b1/b2 are intentionally NOT passed: a per-channel constant before
    # training-mode BN is cancelled exactly by the batch mean.
    args = [x, k1c, k1s, k2c, k2s, s_mats, t_mat,
            tile(params["g1"]), tile(params["be1"]),
            tile(params["g2"]), tile(params["be2"])]
    if use_1x1conv:
        args.append(tile(params["b3"]))

    kernel = _make_fused_residual_kernel(N, H, W, Cin, Cout, use_1x1conv)
    out2d = pl.pallas_call(
        kernel,
        out_shape=jax.ShapeDtypeStruct((R, WCout), jnp.float32),
        grid=(1,),
        in_specs=[_full_spec(a.shape) for a in args],
        out_specs=_full_spec((R, WCout)),
        compiler_params=pltpu.CompilerParams(
            dimension_semantics=("arbitrary",),
            vmem_limit_bytes=32 * 1024 * 1024),
    )(*args)
    # TODO(synk): for real ResNet shapes, tile the grid over N*H row blocks
    # (halo'd via overlapping index_map), mark that axis "parallel" so v7x's
    # two TensorCores split rows, size blocks for ~1/3 of the per-TC VMEM
    # budget (64 MiB on v7x), and do BN as per-tile partial sum/sumsq + a
    # finalize pass.  The single-program whole-array design is sized for the
    # toy shapes exercised here.

    return jnp.transpose(out2d.reshape(N, H, W, Cout), (0, 3, 1, 2))   # NCHW


# ---------------- deterministic parameter init (shapes from __init__) ----------------
def init_params(key, input_channels, num_channels, use_1x1conv):
    ks = jax.random.split(key, 10)
    p = {
        "w1": jax.random.normal(ks[0], (3, 3, input_channels, num_channels), jnp.float32) * 0.1,
        "b1": jax.random.normal(ks[1], (num_channels,), jnp.float32) * 0.1,
        "w2": jax.random.normal(ks[2], (3, 3, num_channels, num_channels), jnp.float32) * 0.1,
        "b2": jax.random.normal(ks[3], (num_channels,), jnp.float32) * 0.1,
        "g1": 1.0 + jax.random.normal(ks[4], (num_channels,), jnp.float32) * 0.1,
        "be1": jax.random.normal(ks[5], (num_channels,), jnp.float32) * 0.1,
        "g2": 1.0 + jax.random.normal(ks[6], (num_channels,), jnp.float32) * 0.1,
        "be2": jax.random.normal(ks[7], (num_channels,), jnp.float32) * 0.1,
    }
    if use_1x1conv:
        p["w3"] = jax.random.normal(ks[8], (1, 1, input_channels, num_channels), jnp.float32) * 0.1
        p["b3"] = jax.random.normal(ks[9], (num_channels,), jnp.float32) * 0.1
    return p


# ---------------- pure-JAX reference (mirrors the PyTorch forward) ----------------
def ref_restidual(x_nchw, p, use_1x1conv):
    dn = ("NCHW", "HWIO", "NCHW")

    def conv(x, w, bias, pad):
        y = jax.lax.conv_general_dilated(x, w, (1, 1), ((pad, pad), (pad, pad)),
                                         dimension_numbers=dn)
        return y + bias[None, :, None, None]

    def bn(x, g, be):
        m = x.mean(axis=(0, 2, 3), keepdims=True)
        v = ((x - m) ** 2).mean(axis=(0, 2, 3), keepdims=True)
        return g[None, :, None, None] * (x - m) * jax.lax.rsqrt(v + _EPS) + be[None, :, None, None]

    y = jax.nn.relu(bn(conv(x_nchw, p["w1"], p["b1"], 1), p["g1"], p["be1"]))
    y = bn(conv(y, p["w2"], p["b2"], 1), p["g2"], p["be2"])
    sc = conv(x_nchw, p["w3"], p["b3"], 0) if use_1x1conv else x_nchw
    return jax.nn.relu(y + sc)


if __name__ == "__main__":
    key = jax.random.PRNGKey(0)
    kx1, kx2, kp1, kp2 = jax.random.split(key, 4)

    # Case 1: Restidual(8, 8) -> identity shortcut
    x1 = jax.random.normal(kx1, (2, 8, 16, 16), jnp.float32)
    p1 = init_params(kp1, 8, 8, use_1x1conv=False)
    out1 = jax.block_until_ready(restidual_forward(x1, p1, use_1x1conv=False))
    ref1 = ref_restidual(x1, p1, use_1x1conv=False)
    assert out1.shape == (2, 8, 16, 16)
    assert jnp.allclose(out1, ref1, atol=2e-4, rtol=2e-4), float(jnp.max(jnp.abs(out1 - ref1)))

    # Case 2: Restidual(4, 8, use_1x1conv=True) -> projection shortcut
    x2 = jax.random.normal(kx2, (2, 4, 16, 16), jnp.float32)
    p2 = init_params(kp2, 4, 8, use_1x1conv=True)
    out2 = jax.block_until_ready(restidual_forward(x2, p2, use_1x1conv=True))
    ref2 = ref_restidual(x2, p2, use_1x1conv=True)
    assert out2.shape == (2, 8, 16, 16)
    assert jnp.allclose(out2, ref2, atol=2e-4, rtol=2e-4), float(jnp.max(jnp.abs(out2 - ref2)))

    print("KERNEL_OK")
</pallas_src>

<mosaic_0001>
module attributes {stable_mosaic.version = 11 : i64} {
  func.func @kernel(%arg0: i32, %arg1: memref<32x128xf32, #tpu.memory_space<vmem>>, %arg2: memref<128x128xf32, #tpu.memory_space<vmem>>, %arg3: memref<2x128x128xf32, #tpu.memory_space<vmem>>, %arg4: memref<128x128xf32, #tpu.memory_space<vmem>>, %arg5: memref<2x128x128xf32, #tpu.memory_space<vmem>>, %arg6: memref<2x32x32xf32, #tpu.memory_space<vmem>>, %arg7: memref<128x128xf32, #tpu.memory_space<vmem>>, %arg8: memref<1x128xf32, #tpu.memory_space<vmem>>, %arg9: memref<1x128xf32, #tpu.memory_space<vmem>>, %arg10: memref<1x128xf32, #tpu.memory_space<vmem>>, %arg11: memref<1x128xf32, #tpu.memory_space<vmem>>, %arg12: memref<32x128xf32, #tpu.memory_space<vmem>>) attributes {dimension_semantics = [#tpu.dimension_semantics<arbitrary>], iteration_bounds = array<i64: 1>, scalar_prefetch = 0 : i64, scratch_operands = 0 : i64, tpu.core_type = #tpu.core_type<tc>, window_params = [{pipeline_mode = #tpu.pipeline_mode<synchronous>, transform_indices = @transform_0, window_bounds = array<i64: 32, 128>}, {pipeline_mode = #tpu.pipeline_mode<synchronous>, transform_indices = @transform_1, window_bounds = array<i64: 128, 128>}, {pipeline_mode = #tpu.pipeline_mode<synchronous>, transform_indices = @transform_2, window_bounds = array<i64: 2, 128, 128>}, {pipeline_mode = #tpu.pipeline_mode<synchronous>, transform_indices = @transform_3, window_bounds = array<i64: 128, 128>}, {pipeline_mode = #tpu.pipeline_mode<synchronous>, transform_indices = @transform_4, window_bounds = array<i64: 2, 128, 128>}, {pipeline_mode = #tpu.pipeline_mode<synchronous>, transform_indices = @transform_5, window_bounds = array<i64: 2, 32, 32>}, {pipeline_mode = #tpu.pipeline_mode<synchronous>, transform_indices = @transform_6, window_bounds = array<i64: 128, 128>}, {pipeline_mode = #tpu.pipeline_mode<synchronous>, transform_indices = @transform_7, window_bounds = array<i64: 1, 128>}, {pipeline_mode = #tpu.pipeline_mode<synchronous>, transform_indices = @transform_8, window_bounds = array<i64: 1, 128>}, {pipeline_mode = #tpu.pipeline_mode<synchronous>, transform_indices = @transform_9, window_bounds = array<i64: 1, 128>}, {pipeline_mode = #tpu.pipeline_mode<synchronous>, transform_indices = @transform_10, window_bounds = array<i64: 1, 128>}, {pipeline_mode = #tpu.pipeline_mode<synchronous>, transform_indices = @transform_11, window_bounds = array<i64: 32, 128>}]} {
    %c0 = arith.constant 0 : index
    %c0_0 = arith.constant 0 : index
    %0 = vector.load %arg1[%c0, %c0_0] : memref<32x128xf32, #tpu.memory_space<vmem>>, vector<32x128xf32>
    %c0_1 = arith.constant 0 : index
    %c0_2 = arith.constant 0 : index
    %1 = vector.load %arg2[%c0_1, %c0_2] : memref<128x128xf32, #tpu.memory_space<vmem>>, vector<128x128xf32>
    %cst = arith.constant dense<0.000000e+00> : vector<32x128xf32>
    %2 = tpu.matmul %0, %1, %cst {dimension_numbers = #tpu.dot_dimension_numbers<[1], [0], [0], [1], [0, 0, 1, 1], [], []>} : vector<32x128xf32>, vector<128x128xf32>, vector<32x128xf32> -> vector<32x128xf32>
    %c0_3 = arith.constant 0 : index
    %c0_4 = arith.constant 0 : index
    %c0_5 = arith.constant 0 : index
    %3 = vector.load %arg6[%c0_3, %c0_4, %c0_5] : memref<2x32x32xf32, #tpu.memory_space<vmem>>, vector<1x32x32xf32>
    %4 = vector.shape_cast %3 : vector<1x32x32xf32> to vector<32x32xf32>
    %c0_6 = arith.constant 0 : index
    %c0_7 = arith.constant 0 : index
    %c0_8 = arith.constant 0 : index
    %5 = vector.load %arg3[%c0_6, %c0_7, %c0_8] : memref<2x128x128xf32, #tpu.memory_space<vmem>>, vector<1x128x128xf32>
    %6 = vector.shape_cast %5 : vector<1x128x128xf32> to vector<128x128xf32>
    %cst_9 = arith.constant dense<0.000000e+00> : vector<32x128xf32>
    %7 = tpu.matmul %0, %6, %cst_9 {dimension_numbers = #tpu.dot_dimension_numbers<[1], [0], [0], [1], [0, 0, 1, 1], [], []>} : vector<32x128xf32>, vector<128x128xf32>, vector<32x128xf32> -> vector<32x128xf32>
    %cst_10 = arith.constant dense<0.000000e+00> : vector<32x128xf32>
    %8 = tpu.matmul %4, %7, %cst_10 {dimension_numbers = #tpu.dot_dimension_numbers<[1], [0], [0], [1], [0, 0, 1, 1], [], []>} : vector<32x32xf32>, vector<32x128xf32>, vector<32x128xf32> -> vector<32x128xf32>
    %c1 = arith.constant 1 : index
    %c0_11 = arith.constant 0 : index
    %c0_12 = arith.constant 0 : index
    %9 = vector.load %arg6[%c1, %c0_11, %c0_12] : memref<2x32x32xf32, #tpu.memory_space<vmem>>, vector<1x32x32xf32>
    %10 = vector.shape_cast %9 : vector<1x32x32xf32> to vector<32x32xf32>
    %c1_13 = arith.constant 1 : index
    %c0_14 = arith.constant 0 : index
    %c0_15 = arith.constant 0 : index
    %11 = vector.load %arg3[%c1_13, %c0_14, %c0_15] : memref<2x128x128xf32, #tpu.memory_space<vmem>>, vector<1x128x128xf32>
    %12 = vector.shape_cast %11 : vector<1x128x128xf32> to vector<128x128xf32>
    %cst_16 = arith.constant dense<0.000000e+00> : vector<32x128xf32>
    %13 = tpu.matmul %0, %12, %cst_16 {dimension_numbers = #tpu.dot_dimension_numbers<[1], [0], [0], [1], [0, 0, 1, 1], [], []>} : vector<32x128xf32>, vector<128x128xf32>, vector<32x128xf32> -> vector<32x128xf32>
    %cst_17 = arith.constant dense<0.000000e+00> : vector<32x128xf32>
    %14 = tpu.matmul %10, %13, %cst_17 {dimension_numbers = #tpu.dot_dimension_numbers<[1], [0], [0], [1], [0, 0, 1, 1], [], []>} : vector<32x32xf32>, vector<32x128xf32>, vector<32x128xf32> -> vector<32x128xf32>
    %15 = arith.addf %8, %14 : vector<32x128xf32>
    %16 = arith.addf %15, %2 : vector<32x128xf32>
    %cst_18 = arith.constant dense<0.000000e+00> : vector<128xf32>
    %17 = vector.multi_reduction <add>, %16, %cst_18 [0] : vector<32x128xf32> to vector<128xf32>
    %18 = vector.shape_cast %17 : vector<128xf32> to vector<1x128xf32>
    %19 = arith.mulf %16, %16 : vector<32x128xf32>
    %cst_19 = arith.constant dense<0.000000e+00> : vector<128xf32>
    %20 = vector.multi_reduction <add>, %19, %cst_19 [0] : vector<32x128xf32> to vector<128xf32>
    %21 = vector.shape_cast %20 : vector<128xf32> to vector<1x128xf32>
    %c0_20 = arith.constant 0 : index
    %c0_21 = arith.constant 0 : index
    %22 = vector.load %arg7[%c0_20, %c0_21] : memref<128x128xf32, #tpu.memory_space<vmem>>, vector<128x128xf32>
    %cst_22 = arith.constant dense<0.000000e+00> : vector<1x128xf32>
    %23 = tpu.matmul %18, %22, %cst_22 {dimension_numbers = #tpu.dot_dimension_numbers<[1], [0], [0], [1], [0, 0, 1, 1], [], []>} : vector<1x128xf32>, vector<128x128xf32>, vector<1x128xf32> -> vector<1x128xf32>
    %cst_23 = arith.constant 0.001953125 : f32
    %24 = vector.broadcast %cst_23 : f32 to vector<1x128xf32>
    %25 = arith.mulf %23, %24 : vector<1x128xf32>
    %c0_24 = arith.constant 0 : index
    %c0_25 = arith.constant 0 : index
    %26 = vector.load %arg7[%c0_24, %c0_25] : memref<128x128xf32, #tpu.memory_space<vmem>>, vector<128x128xf32>
    %cst_26 = arith.constant dense<0.000000e+00> : vector<1x128xf32>
    %27 = tpu.matmul %21, %26, %cst_26 {dimension_numbers = #tpu.dot_dimension_numbers<[1], [0], [0], [1], [0, 0, 1, 1], [], []>} : vector<1x128xf32>, vector<128x128xf32>, vector<1x128xf32> -> vector<1x128xf32>
    %cst_27 = arith.constant 0.001953125 : f32
    %28 = vector.broadcast %cst_27 : f32 to vector<1x128xf32>
    %29 = arith.mulf %27, %28 : vector<1x128xf32>
    %30 = arith.mulf %25, %25 : vector<1x128xf32>
    %31 = arith.subf %29, %30 : vector<1x128xf32>
    %cst_28 = arith.constant 0.000000e+00 : f32
    %32 = vector.broadcast %cst_28 : f32 to vector<1x128xf32>
    %33 = arith.maximumf %31, %32 : vector<1x128xf32>
    %c0_29 = arith.constant 0 : index
    %c0_30 = arith.constant 0 : index
    %34 = vector.load %arg8[%c0_29, %c0_30] : memref<1x128xf32, #tpu.memory_space<vmem>>, vector<1x128xf32>
    %cst_31 = arith.constant 9.99999974E-6 : f32
    %35 = vector.broadcast %cst_31 : f32 to vector<1x128xf32>
    %36 = arith.addf %33, %35 : vector<1x128xf32>
    %37 = math.rsqrt %36 : vector<1x128xf32>
    %38 = arith.mulf %34, %37 : vector<1x128xf32>
    %c0_32 = arith.constant 0 : index
    %c0_33 = arith.constant 0 : index
    %39 = vector.load %arg9[%c0_32, %c0_33] : memref<1x128xf32, #tpu.memory_space<vmem>>, vector<1x128xf32>
    %40 = arith.mulf %25, %38 : vector<1x128xf32>
    %41 = arith.subf %39, %40 : vector<1x128xf32>
    %42 = vector.broadcast %38 : vector<1x128xf32> to vector<32x128xf32>
    %43 = arith.mulf %16, %42 : vector<32x128xf32>
    %44 = vector.broadcast %41 : vector<1x128xf32> to vector<32x128xf32>
    %45 = arith.addf %43, %44 : vector<32x128xf32>
    %cst_34 = arith.constant 0.000000e+00 : f32
    %46 = vector.broadcast %cst_34 : f32 to vector<32x128xf32>
    %47 = arith.maximumf %45, %46 : vector<32x128xf32>
    %c0_35 = arith.constant 0 : index
    %c0_36 = arith.constant 0 : index
    %48 = vector.load %arg4[%c0_35, %c0_36] : memref<128x128xf32, #tpu.memory_space<vmem>>, vector<128x128xf32>
    %cst_37 = arith.constant dense<0.000000e+00> : vector<32x128xf32>
    %49 = tpu.matmul %47, %48, %cst_37 {dimension_numbers = #tpu.dot_dimension_numbers<[1], [0], [0], [1], [0, 0, 1, 1], [], []>} : vector<32x128xf32>, vector<128x128xf32>, vector<32x128xf32> -> vector<32x128xf32>
    %c0_38 = arith.constant 0 : index
    %c0_39 = arith.constant 0 : index
    %c0_40 = arith.constant 0 : index
    %50 = vector.load %arg6[%c0_38, %c0_39, %c0_40] : memref<2x32x32xf32, #tpu.memory_space<vmem>>, vector<1x32x32xf32>
    %51 = vector.shape_cast %50 : vector<1x32x32xf32> to vector<32x32xf32>
    %c0_41 = arith.constant 0 : index
    %c0_42 = arith.constant 0 : index
    %c0_43 = arith.constant 0 : index
    %52 = vector.load %arg5[%c0_41, %c0_42, %c0_43] : memref<2x128x128xf32, #tpu.memory_space<vmem>>, vector<1x128x128xf32>
    %53 = vector.shape_cast %52 : vector<1x128x128xf32> to vector<128x128xf32>
    %cst_44 = arith.constant dense<0.000000e+00> : vector<32x128xf32>
    %54 = tpu.matmul %47, %53, %cst_44 {dimension_numbers = #tpu.dot_dimension_numbers<[1], [0], [0], [1], [0, 0, 1, 1], [], []>} : vector<32x128xf32>, vector<128x128xf32>, vector<32x128xf32> -> vector<32x128xf32>
    %cst_45 = arith.constant dense<0.000000e+00> : vector<32x128xf32>
    %55 = tpu.matmul %51, %54, %cst_45 {dimension_numbers = #tpu.dot_dimension_numbers<[1], [0], [0], [1], [0, 0, 1, 1], [], []>} : vector<32x32xf32>, vector<32x128xf32>, vector<32x128xf32> -> vector<32x128xf32>
    %c1_46 = arith.constant 1 : index
    %c0_47 = arith.constant 0 : index
    %c0_48 = arith.constant 0 : index
    %56 = vector.load %arg6[%c1_46, %c0_47, %c0_48] : memref<2x32x32xf32, #tpu.memory_space<vmem>>, vector<1x32x32xf32>
    %57 = vector.shape_cast %56 : vector<1x32x32xf32> to vector<32x32xf32>
    %c1_49 = arith.constant 1 : index
    %c0_50 = arith.constant 0 : index
    %c0_51 = arith.constant 0 : index
    %58 = vector.load %arg5[%c1_49, %c0_50, %c0_51] : memref<2x128x128xf32, #tpu.memory_space<vmem>>, vector<1x128x128xf32>
    %59 = vector.shape_cast %58 : vector<1x128x128xf32> to vector<128x128xf32>
    %cst_52 = arith.constant dense<0.000000e+00> : vector<32x128xf32>
    %60 = tpu.matmul %47, %59, %cst_52 {dimension_numbers = #tpu.dot_dimension_numbers<[1], [0], [0], [1], [0, 0, 1, 1], [], []>} : vector<32x128xf32>, vector<128x128xf32>, vector<32x128xf32> -> vector<32x128xf32>
    %cst_53 = arith.constant dense<0.000000e+00> : vector<32x128xf32>
    %61 = tpu.matmul %57, %60, %cst_53 {dimension_numbers = #tpu.dot_dimension_numbers<[1], [0], [0], [1], [0, 0, 1, 1], [], []>} : vector<32x32xf32>, vector<32x128xf32>, vector<32x128xf32> -> vector<32x128xf32>
    %62 = arith.addf %55, %61 : vector<32x128xf32>
    %63 = arith.addf %49, %62 : vector<32x128xf32>
    %cst_54 = arith.constant dense<0.000000e+00> : vector<128xf32>
    %64 = vector.multi_reduction <add>, %63, %cst_54 [0] : vector<32x128xf32> to vector<128xf32>
    %65 = vector.shape_cast %64 : vector<128xf32> to vector<1x128xf32>
    %66 = arith.mulf %63, %63 : vector<32x128xf32>
    %cst_55 = arith.constant dense<0.000000e+00> : vector<128xf32>
    %67 = vector.multi_reduction <add>, %66, %cst_55 [0] : vector<32x128xf32> to vector<128xf32>
    %68 = vector.shape_cast %67 : vector<128xf32> to vector<1x128xf32>
    %c0_56 = arith.constant 0 : index
    %c0_57 = arith.constant 0 : index
    %69 = vector.load %arg7[%c0_56, %c0_57] : memref<128x128xf32, #tpu.memory_space<vmem>>, vector<128x128xf32>
    %cst_58 = arith.constant dense<0.000000e+00> : vector<1x128xf32>
    %70 = tpu.matmul %65, %69, %cst_58 {dimension_numbers = #tpu.dot_dimension_numbers<[1], [0], [0], [1], [0, 0, 1, 1], [], []>} : vector<1x128xf32>, vector<128x128xf32>, vector<1x128xf32> -> vector<1x128xf32>
    %cst_59 = arith.constant 0.001953125 : f32
    %71 = vector.broadcast %cst_59 : f32 to vector<1x128xf32>
    %72 = arith.mulf %70, %71 : vector<1x128xf32>
    %c0_60 = arith.constant 0 : index
    %c0_61 = arith.constant 0 : index
    %73 = vector.load %arg7[%c0_60, %c0_61] : memref<128x128xf32, #tpu.memory_space<vmem>>, vector<128x128xf32>
    %cst_62 = arith.constant dense<0.000000e+00> : vector<1x128xf32>
    %74 = tpu.matmul %68, %73, %cst_62 {dimension_numbers = #tpu.dot_dimension_numbers<[1], [0], [0], [1], [0, 0, 1, 1], [], []>} : vector<1x128xf32>, vector<128x128xf32>, vector<1x128xf32> -> vector<1x128xf32>
    %cst_63 = arith.constant 0.001953125 : f32
    %75 = vector.broadcast %cst_63 : f32 to vector<1x128xf32>
    %76 = arith.mulf %74, %75 : vector<1x128xf32>
    %77 = arith.mulf %72, %72 : vector<1x128xf32>
    %78 = arith.subf %76, %77 : vector<1x128xf32>
    %cst_64 = arith.constant 0.000000e+00 : f32
    %79 = vector.broadcast %cst_64 : f32 to vector<1x128xf32>
    %80 = arith.maximumf %78, %79 : vector<1x128xf32>
    %c0_65 = arith.constant 0 : index
    %c0_66 = arith.constant 0 : index
    %81 = vector.load %arg10[%c0_65, %c0_66] : memref<1x128xf32, #tpu.memory_space<vmem>>, vector<1x128xf32>
    %cst_67 = arith.constant 9.99999974E-6 : f32
    %82 = vector.broadcast %cst_67 : f32 to vector<1x128xf32>
    %83 = arith.addf %80, %82 : vector<1x128xf32>
    %84 = math.rsqrt %83 : vector<1x128xf32>
    %85 = arith.mulf %81, %84 : vector<1x128xf32>
    %c0_68 = arith.constant 0 : index
    %c0_69 = arith.constant 0 : index
    %86 = vector.load %arg11[%c0_68, %c0_69] : memref<1x128xf32, #tpu.memory_space<vmem>>, vector<1x128xf32>
    %87 = arith.mulf %72, %85 : vector<1x128xf32>
    %88 = arith.subf %86, %87 : vector<1x128xf32>
    %89 = vector.broadcast %85 : vector<1x128xf32> to vector<32x128xf32>
    %90 = arith.mulf %63, %89 : vector<32x128xf32>
    %91 = vector.broadcast %88 : vector<1x128xf32> to vector<32x128xf32>
    %92 = arith.addf %90, %91 : vector<32x128xf32>
    %93 = arith.addf %92, %0 : vector<32x128xf32>
    %cst_70 = arith.constant 0.000000e+00 : f32
    %94 = vector.broadcast %cst_70 : f32 to vector<32x128xf32>
    %95 = arith.maximumf %93, %94 : vector<32x128xf32>
    %c0_71 = arith.constant 0 : index
    %c0_72 = arith.constant 0 : index
    %96 = vector.load %arg12[%c0_71, %c0_72] : memref<32x128xf32, #tpu.memory_space<vmem>>, vector<32x128xf32>
    tpu.vector_store %arg12[%c0_71, %c0_72], %95 {strides = array<i32>} : memref<32x128xf32, #tpu.memory_space<vmem>>, vector<32x128xf32>,
    return
  }
  func.func @transform_0(%arg0: i32) -> (i32, i32) {
    %c0_i32 = arith.constant 0 : i32
    %c0_i32_0 = arith.constant 0 : i32
    %c0_i32_1 = arith.constant 0 : i32
    return %c0_i32, %c0_i32_0 : i32, i32
  }
  func.func @transform_1(%arg0: i32) -> (i32, i32) {
    %c0_i32 = arith.constant 0 : i32
    %c0_i32_0 = arith.constant 0 : i32
    %c0_i32_1 = arith.constant 0 : i32
    return %c0_i32, %c0_i32_0 : i32, i32
  }
  func.func @transform_2(%arg0: i32) -> (i32, i32, i32) {
    %c0_i32 = arith.constant 0 : i32
    %c0_i32_0 = arith.constant 0 : i32
    %c0_i32_1 = arith.constant 0 : i32
    %c0_i32_2 = arith.constant 0 : i32
    return %c0_i32, %c0_i32_0, %c0_i32_1 : i32, i32, i32
  }
  func.func @transform_3(%arg0: i32) -> (i32, i32) {
    %c0_i32 = arith.constant 0 : i32
    %c0_i32_0 = arith.constant 0 : i32
    %c0_i32_1 = arith.constant 0 : i32
    return %c0_i32, %c0_i32_0 : i32, i32
  }
  func.func @transform_4(%arg0: i32) -> (i32, i32, i32) {
    %c0_i32 = arith.constant 0 : i32
    %c0_i32_0 = arith.constant 0 : i32
    %c0_i32_1 = arith.constant 0 : i32
    %c0_i32_2 = arith.constant 0 : i32
    return %c0_i32, %c0_i32_0, %c0_i32_1 : i32, i32, i32
  }
  func.func @transform_5(%arg0: i32) -> (i32, i32, i32) {
    %c0_i32 = arith.constant 0 : i32
    %c0_i32_0 = arith.constant 0 : i32
    %c0_i32_1 = arith.constant 0 : i32
    %c0_i32_2 = arith.constant 0 : i32
    return %c0_i32, %c0_i32_0, %c0_i32_1 : i32, i32, i32
  }
  func.func @transform_6(%arg0: i32) -> (i32, i32) {
    %c0_i32 = arith.constant 0 : i32
    %c0_i32_0 = arith.constant 0 : i32
    %c0_i32_1 = arith.constant 0 : i32
    return %c0_i32, %c0_i32_0 : i32, i32
  }
  func.func @transform_7(%arg0: i32) -> (i32, i32) {
    %c0_i32 = arith.constant 0 : i32
    %c0_i32_0 = arith.constant 0 : i32
    %c0_i32_1 = arith.constant 0 : i32
    return %c0_i32, %c0_i32_0 : i32, i32
  }
  func.func @transform_8(%arg0: i32) -> (i32, i32) {
    %c0_i32 = arith.constant 0 : i32
    %c0_i32_0 = arith.constant 0 : i32
    %c0_i32_1 = arith.constant 0 : i32
    return %c0_i32, %c0_i32_0 : i32, i32
  }
  func.func @transform_9(%arg0: i32) -> (i32, i32) {
    %c0_i32 = arith.constant 0 : i32
    %c0_i32_0 = arith.constant 0 : i32
    %c0_i32_1 = arith.constant 0 : i32
    return %c0_i32, %c0_i32_0 : i32, i32
  }
  func.func @transform_10(%arg0: i32) -> (i32, i32) {
    %c0_i32 = arith.constant 0 : i32
    %c0_i32_0 = arith.constant 0 : i32
    %c0_i32_1 = arith.constant 0 : i32
    return %c0_i32, %c0_i32_0 : i32, i32
  }
  func.func @transform_11(%arg0: i32) -> (i32, i32) {
    %c0_i32 = arith.constant 0 : i32
    %c0_i32_0 = arith.constant 0 : i32
    %c0_i32_1 = arith.constant 0 : i32
    return %c0_i32, %c0_i32_0 : i32, i32
  }
}

</mosaic_0001>

<bundles_post_ra>
// kernel: restidual_forward.1
= control target key start
LH: loop header
LB: loop body
LE: loop exit
PB: predicated region body
PF: predicated region fallthrough
CT: control target
= control target key end

     0   :  { %vm355_vm0 = vcmask 261120   ;;  %vm2493_vm1 = vmmov 0   ;;  %s3175_s1 = inlined_call_operand.vmem [shape: f32[128,128], index: 1, kind: input, shape index: {}]   ;;  %s3176_s0 = inlined_call_operand.vmem [shape: f32[32,128], index: 0, kind: input, shape index: {}]   ;;  %s3177_s2 = inlined_call_operand.vmem [shape: f32[2,128,128], index: 2, kind: input, shape index: {}]   ;;  %s3178_s5 = inlined_call_operand.vmem [shape: f32[2,32,32], index: 5, kind: input, shape index: {}]   ;;  %s3179_s6 = inlined_call_operand.vmem [shape: f32[128,128], index: 6, kind: input, shape index: {}]   ;;  %s3180_s4 = inlined_call_operand.vmem [shape: f32[2,128,128], index: 4, kind: input, shape index: {}]   ;;  %s3181_s7 = inlined_call_operand.vmem [shape: f32[1,128], index: 7, kind: input, shape index: {}]   ;;  %s3182_s8 = inlined_call_operand.vmem [shape: f32[1,128], index: 8, kind: input, shape index: {}]   ;;  %s3183_s3 = inlined_call_operand.vmem [shape: f32[128,128], index: 3, kind: input, shape index: {}]   ;;  %s3184_s9 = inlined_call_operand.vmem [shape: f32[1,128], index: 9, kind: input, shape index: {}]   ;;  %s3185_s10 = inlined_call_operand.vmem [shape: f32[1,128], index: 10, kind: input, shape index: {}]   ;;  %s3186_s11 = inlined_call_operand.vmem [shape: f32[32,128], index: 11, kind: output, shape index: {}]  }
   0x1   :  { %v42_v0 = vld [vmem:[%s3175_s1] sm:$0xff]  ;;  %v43_v1 = vld [vmem:[%s3175_s1 + $0x8] sm:$0xff]  ;;  %v44_v2 = vld [vmem:[%s3175_s1 + $0x10] sm:$0xff] }
   0x2   :  { %v2148_v3 = vpack.c.bf16 %v43_v1, %v42_v0  ;;  %v45_v4 = vld [vmem:[%s3175_s1 + $0x18] sm:$0xff]  ;;  %v46_v6 = vld [vmem:[%s3175_s1 + $0x20] sm:$0xff]  ;;  %v47_v7 = vld [vmem:[%s3175_s1 + $0x28] sm:$0xff] }
   0x3   :  { %v2152_v5 = vpack.c.bf16 %v45_v4, %v44_v2  ;;  %v2156_v8 = vpack.c.bf16 %v47_v7, %v46_v6  ;;  %v2576_v9 = vld [vmem:[%s3176_s0] sm:$0xff]  ;;  %v48_v10 = vld [vmem:[%s3175_s1 + $0x30] sm:$0xff]  ;;  %v49_v11 = vld [vmem:[%s3175_s1 + $0x38] sm:$0xff] }
   0x4   :  { %2149 = vmatprep.subr.bf16.mxu0 %v2148_v3  ;;  %1756 = vmatprep.mubr.f32.mxu0 %v2576_v9  ;;  %v147_v12 = vld [vmem:[%s3177_s2] sm:$0xff]  ;;  %v148_v13 = vld [vmem:[%s3177_s2 + $0x8] sm:$0xff]  ;;  %v149_v15 = vld [vmem:[%s3177_s2 + $0x10] sm:$0xff]  ;;  %v2160_v16 = vpack.c.bf16 %v49_v11, %v48_v10 }
   0x5   :  { %2151 = vmatpush3.bf16.msra.mxu0 %v2148_v3  ;;  %1794 = vmatprep.mubr.f32.mxu1 %v2576_v9  ;;  %v2180_v14 = vpack.c.bf16 %v148_v13, %v147_v12  ;;  %v50_v17 = vld [vmem:[%s3175_s1 + $0x40] sm:$0xff]  ;;  %v150_v18 = vld [vmem:[%s3177_s2 + $0x18] sm:$0xff]  ;;  %v51_v19 = vld [vmem:[%s3175_s1 + $0x48] sm:$0xff] }
   0x6   :  { %2153 = vmatprep.subr.bf16.mxu0 %v2152_v5  ;;  %v2184_v20 = vpack.c.bf16 %v150_v18, %v149_v15  ;;  %v151_v21 = vld [vmem:[%s3177_s2 + $0x20] sm:$0xff]  ;;  %v152_v22 = vld [vmem:[%s3177_s2 + $0x28] sm:$0xff]  ;;  %v2164_v24 = vpack.c.bf16 %v51_v19, %v50_v17  ;;  %v153_v25 = vld [vmem:[%s3177_s2 + $0x30] sm:$0xff] }
   0x7   :  { %2181 = vmatprep.subr.bf16.mxu1 %v2180_v14  ;;  %v2188_v23 = vpack.c.bf16 %v152_v22, %v151_v21  ;;  %v154_v26 = vld [vmem:[%s3177_s2 + $0x38] sm:$0xff]  ;;  %v52_v27 = vld [vmem:[%s3175_s1 + $0x50] sm:$0xff]  ;;  %v155_v31 = vld [vmem:[%s3177_s2 + $0x40] sm:$0xff] }
   0x8   :  { %2183 = vmatpush3.bf16.msra.mxu1 %v2180_v14  ;;  %v53_v28 = vld [vmem:[%s3175_s1 + $0x58] sm:$0xff]  ;;  %v2192_v29 = vpack.c.bf16 %v154_v26, %v153_v25  ;;  %v156_v32 = vld [vmem:[%s3177_s2 + $0x48] sm:$0xff]  ;;  %v54_v33 = vld [vmem:[%s3175_s1 + $0x60] sm:$0xff] }
   0x9   :  { %2155 = vmatpush3.bf16.msra.mxu0 %v2152_v5  ;;  %2185 = vmatprep.subr.bf16.mxu1 %v2184_v20  ;;  %v2168_v30 = vpack.c.bf16 %v53_v28, %v52_v27  ;;  %v55_v34 = vld [vmem:[%s3175_s1 + $0x68] sm:$0xff]  ;;  %v2196_v35 = vpack.c.bf16 %v156_v32, %v155_v31  ;;  %v157_v37 = vld [vmem:[%s3177_s2 + $0x50] sm:$0xff]  ;;  %v158_v38 = vld [vmem:[%s3177_s2 + $0x58] sm:$0xff] }
   0xa   :  { %2157 = vmatprep.subr.bf16.mxu0 %v2156_v8  ;;  %v2172_v36 = vpack.c.bf16 %v55_v34, %v54_v33  ;;  %v56_v39 = vld [vmem:[%s3175_s1 + $0x70] sm:$0xff]  ;;  %v57_v40 = vld [vmem:[%s3175_s1 + $0x78] sm:$0xff]  ;;  %v2200_v41 = vpack.c.bf16 %v158_v38, %v157_v37  ;;  %v159_v43 = vld [vmem:[%s3177_s2 + $0x60] sm:$0xff]  ;;  %v2492_v38 = vmov 0.0|0.0  }
   0xb   :  { %v2176_v42 = vpack.c.bf16 %v57_v40, %v56_v39  ;;  %v160_v44 = vld [vmem:[%s3177_s2 + $0x68] sm:$0xff]  ;;  %v1456_v45 = vld [vmem:[%s3177_s2 + $0x80] sm:$0xff]  ;;  %v1458_v49 = vld [vmem:[%s3177_s2 + $0x90] sm:$0xff] }
   0xc   :  { %2187 = vmatpush3.bf16.msra.mxu1 %v2184_v20  ;;  %v1457_v46 = vld [vmem:[%s3177_s2 + $0x88] sm:$0xff]  ;;  %v2204_v47 = vpack.c.bf16 %v160_v44, %v159_v43  ;;  %v1459_v50 = vld [vmem:[%s3177_s2 + $0x98] sm:$0xff]  ;;  %v161_v51 = vld [vmem:[%s3177_s2 + $0x70] sm:$0xff] }
   0xd   :  { %2159 = vmatpush3.bf16.msra.mxu0 %v2156_v8  ;;  %2189 = vmatprep.subr.bf16.mxu1 %v2188_v23  ;;  %v2212_v48 = vpack.c.bf16 %v1457_v46, %v1456_v45  ;;  %v162_v52 = vld [vmem:[%s3177_s2 + $0x78] sm:$0xff]  ;;  %v2673_v53 = vld [vmem:[%s3176_s0 + $0x8] sm:$0xff]  ;;  %v2216_v54 = vpack.c.bf16 %v1459_v50, %v1458_v49  ;;  %v2678_v55 = vld [vmem:[%s3176_s0 + $0x10] sm:$0xff] }
   0xe   :  { %2161 = vmatprep.subr.bf16.mxu0 %v2160_v16  ;;  %v2208_v56 = vpack.c.bf16 %v162_v52, %v161_v51  ;;  %v1460_v57 = vld [vmem:[%s3177_s2 + $0xa0] sm:$0xff]  ;;  %v1461_v58 = vld [vmem:[%s3177_s2 + $0xa8] sm:$0xff]  ;;  %v2691_v59 = vld [vmem:[%s3176_s0 + $0x18] sm:$0xff] }
   0xf   :  { %v2220_v60 = vpack.c.bf16 %v1461_v58, %v1460_v57  ;;  %v1462_v61 = vld [vmem:[%s3177_s2 + $0xb0] sm:$0xff]  ;;  %v1463_v62 = vld [vmem:[%s3177_s2 + $0xb8] sm:$0xff]  ;;  %v1464_v0 = vld [vmem:[%s3177_s2 + $0xc0] sm:$0xff] }
  0x10   :  { %2191 = vmatpush3.bf16.msra.mxu1 %v2188_v23  ;;  %v2224_v63 = vpack.c.bf16 %v1463_v62, %v1462_v61  ;;  %v1465_v1 = vld [vmem:[%s3177_s2 + $0xc8] sm:$0xff]  ;;  %v1466_v3 = vld [vmem:[%s3177_s2 + $0xd0] sm:$0xff]  ;;  %v1467_v4 = vld [vmem:[%s3177_s2 + $0xd8] sm:$0xff] }
  0x11   :  { %2163 = vmatpush3.bf16.msra.mxu0 %v2160_v16  ;;  %2193 = vmatprep.subr.bf16.mxu1 %v2192_v29  ;;  %v2228_v2 = vpack.c.bf16 %v1465_v1, %v1464_v0  ;;  %v2232_v5 = vpack.c.bf16 %v1467_v4, %v1466_v3  ;;  %v1468_v6 = vld [vmem:[%s3177_s2 + $0xe0] sm:$0xff]  ;;  %v1469_v7 = vld [vmem:[%s3177_s2 + $0xe8] sm:$0xff]  ;;  %v1471_v10 = vld [vmem:[%s3177_s2 + $0xf8] sm:$0xff]  ;;  %v2494_v0 = vmov 0.0  }
  0x12   :  { %2165 = vmatprep.subr.bf16.mxu0 %v2164_v24  ;;  %v2236_v8 = vpack.c.bf16 %v1469_v7, %v1468_v6  ;;  %v2734_v12 = vld [vmem:[%s3178_s5 + $0x20] sm:$0xff]  ;;  %v2763_v31 = vld [vmem:[%s3178_s5 + $0x38] sm:$0xff]  ;;  %v577_v34 = vld [vmem:[%s3179_s6 + $0x8] sm:$0xff] }
  0x13   :  { %v2768_v32 = vld [vmem:[%s3178_s5] sm:$0xff]  ;;  %v2790_v37 = vld [vmem:[%s3178_s5 + $0x10] sm:$0xff]  ;;  %v579_v40 = vld [vmem:[%s3179_s6 + $0x18] sm:$0xff] }
  0x14   :  { %2195 = vmatpush3.bf16.msra.mxu1 %v2192_v29  ;;  %v2749_v29 = vld [vmem:[%s3178_s5 + $0x28] sm:$0xff]  ;;  %v576_v33 = vld [vmem:[%s3179_s6] sm:$0xff]  ;;  %v578_v39 = vld [vmem:[%s3179_s6 + $0x10] sm:$0xff] }
  0x15   :  { %2167 = vmatpush3.bf16.msra.mxu0 %v2164_v24  ;;  %2197 = vmatprep.subr.bf16.mxu1 %v2196_v35  ;;  %v580_v43 = vld [vmem:[%s3179_s6 + $0x20] sm:$0xff]  ;;  %v581_v44 = vld [vmem:[%s3179_s6 + $0x28] sm:$0xff]  ;;  %v582_v46 = vld [vmem:[%s3179_s6 + $0x30] sm:$0xff] }
  0x16   :  { %2169 = vmatprep.subr.bf16.mxu0 %v2168_v30  ;;  %v2822_v45 = vpack.c.bf16 %v581_v44, %v580_v43  ;;  %v584_v49 = vld [vmem:[%s3179_s6 + $0x40] sm:$0xff]  ;;  %v585_v50 = vld [vmem:[%s3179_s6 + $0x48] sm:$0xff]  ;;  %v586_v52 = vld [vmem:[%s3179_s6 + $0x50] sm:$0xff] }
  0x17   :  { %v2842_v51 = vpack.c.bf16 %v585_v50, %v584_v49  ;;  %v588_v57 = vld [vmem:[%s3179_s6 + $0x60] sm:$0xff]  ;;  %v589_v58 = vld [vmem:[%s3179_s6 + $0x68] sm:$0xff]  ;;  %v590_v61 = vld [vmem:[%s3179_s6 + $0x70] sm:$0xff] }
  0x18   :  { %2199 = vmatpush3.bf16.msra.mxu1 %v2196_v35  ;;  %v2783_v35 = vld [vmem:[%s3178_s5 + $0x8] sm:$0xff]  ;;  %v591_v62 = vld [vmem:[%s3179_s6 + $0x78] sm:$0xff]  ;;  %v1480_v44 = vld [vmem:[%s3180_s4 + $0x80] sm:$0xff] }
  0x19   :  { %2171 = vmatpush3.bf16.msra.mxu0 %v2168_v30  ;;  %2201 = vmatprep.subr.bf16.mxu1 %v2200_v41  ;;  %v2754_v30 = vld [vmem:[%s3178_s5 + $0x30] sm:$0xff]  ;;  %v785_v43 = vld [vmem:[%s3180_s4 + $0x8] sm:$0xff] }
  0x1a   :  { %2173 = vmatprep.subr.bf16.mxu0 %v2172_v36  ;;  %v786_v50 = vld [vmem:[%s3180_s4 + $0x10] sm:$0xff] }
  0x1c   :  { %2203 = vmatpush3.bf16.msra.mxu1 %v2200_v41  ;;  %v2806_v41 = vld [vmem:[%s3178_s5 + $0x18] sm:$0xff] }
  0x1d   :  { %2175 = vmatpush3.bf16.msra.mxu0 %v2172_v36  ;;  %2205 = vmatprep.subr.bf16.mxu1 %v2204_v47  ;;  %v2785_v36 = vpack.c.bf16 %v577_v34, %v576_v33 }
  0x1e   :  { %2177 = vmatprep.subr.bf16.mxu0 %v2176_v42 }
  0x20   :  { %2207 = vmatpush3.bf16.msra.mxu1 %v2204_v47  ;;  %v583_v47 = vld [vmem:[%s3179_s6 + $0x38] sm:$0xff] }
  0x21   :  { %2179 = vmatpush3.bf16.msra.mxu0 %v2176_v42  ;;  %2209 = vmatprep.subr.bf16.mxu1 %v2208_v56  ;;  %v2809_v42 = vpack.c.bf16 %v579_v40, %v578_v39  ;;  %v784_v40 = vld [vmem:[%s3180_s4] sm:$0xff] }
  0x22   :  { %2213 = vmatprep.subr.bf16.mxu0 %v2212_v48 }
  0x24   :  { %1757 = vmatmul.mubr.f32.vlgmr.msra.gmra.mrb[0].mxu0 %v2673_v53  ;;  %2211 = vmatpush3.bf16.msra.mxu1 %v2208_v56 }
  0x25   :  { %2215 = vmatpush3.bf16.msra.mxu0 %v2212_v48  ;;  %1759 = vmatprep.mubr.f32.mxu0 %v2678_v55  ;;  %v2832_v48 = vpack.c.bf16 %v583_v47, %v582_v46  ;;  %v2308_v46 = vpack.c.bf16 %v785_v43, %v784_v40  ;;  %v1481_v47 = vld [vmem:[%s3180_s4 + $0x88] sm:$0xff] }
  0x26   :  { %2217 = vmatprep.subr.bf16.mxu0 %v2216_v54  ;;  %v2340_v49 = vpack.c.bf16 %v1481_v47, %v1480_v44  ;;  %v1493_v43 = vld [vmem:[%s3180_s4 + $0xe8] sm:$0xff]  ;;  %v798_v44 = vld [vmem:[%s3180_s4 + $0x70] sm:$0xff] }
  0x27   :  { %1795 = vmatmul.mubr.f32.vlgmr.msra.gmra.mrb[0].mxu1 %v2673_v53 }
  0x28   :  { %1760 = vmatmul.mubr.f32.gmra.mrb[2].mxu0 %v2691_v59  ;;  %1797 = vmatprep.mubr.f32.mxu1 %v2678_v55 }
  0x29   :  { %2219 = vmatpush3.bf16.msra.mxu0 %v2216_v54  ;;  %1832 = vmatprep.mubr.f32.mxu0 %v2576_v9  ;;  %v1470_v9 = vld [vmem:[%s3177_s2 + $0xf0] sm:$0xff]  ;;  %v587_v54 = vld [vmem:[%s3179_s6 + $0x58] sm:$0xff] }
  0x2a   :  { %2221 = vmatprep.subr.bf16.mxu0 %v2220_v60  ;;  %v2240_v11 = vpack.c.bf16 %v1471_v10, %v1470_v9  ;;  %v2852_v56 = vpack.c.bf16 %v587_v54, %v586_v52  ;;  %v787_v52 = vld [vmem:[%s3180_s4 + $0x18] sm:$0xff]  ;;  %v1482_v54 = vld [vmem:[%s3180_s4 + $0x90] sm:$0xff] }
  0x2b   :  { %1798 = vmatmul.mubr.f32.gmra.mrb[2].mxu1 %v2691_v59 }
  0x2c   :  { %1846 = vmatprep.mubr.msk.f32.mxu1 %vm355_vm0, %v2734_v12 }
  0x2d   :  { %2223 = vmatpush3.bf16.msra.mxu0 %v2220_v60  ;;  %v2862_v60 = vpack.c.bf16 %v589_v58, %v588_v57  ;;  %v2312_v57 = vpack.c.bf16 %v787_v52, %v786_v50  ;;  %v1483_v58 = vld [vmem:[%s3180_s4 + $0x98] sm:$0xff] }
  0x2e   :  { %2225 = vmatprep.subr.bf16.mxu0 %v2224_v63  ;;  %v1495_v50 = vld [vmem:[%s3180_s4 + $0xf8] sm:$0xff] }
  0x31   :  { %2227 = vmatpush3.bf16.msra.mxu0 %v2224_v63  ;;  %v2872_v63 = vpack.c.bf16 %v591_v62, %v590_v61  ;;  %v2344_v61 = vpack.c.bf16 %v1483_v58, %v1482_v54  ;;  %v788_v62 = vld [vmem:[%s3180_s4 + $0x20] sm:$0xff] }
  0x32   :  { %2229 = vmatprep.subr.bf16.mxu0 %v2228_v2 }
  0x35   :  { %2231 = vmatpush3.bf16.msra.mxu0 %v2228_v2 }
  0x36   :  { %2233 = vmatprep.subr.bf16.mxu0 %v2232_v5 }
  0x39   :  { %2235 = vmatpush3.bf16.msra.mxu0 %v2232_v5 }
  0x3a   :  { %2237 = vmatprep.subr.bf16.mxu0 %v2236_v8 }
  0x3d   :  { %2239 = vmatpush3.bf16.msra.mxu0 %v2236_v8 }
  0x3e   :  { %2241 = vmatprep.subr.bf16.mxu0 %v2240_v11 }
  0x41   :  { %2243 = vmatpush3.bf16.msra.mxu0 %v2240_v11 }
  0x42   :  { %2309 = vmatprep.subr.bf16.mxu0 %v2308_v46 }
  0x44   :  { %1833 = vmatmul.mubr.f32.vlgmr.msra.gmra.mrb[4].mxu0 %v2673_v53 }
  0x45   :  { %1835 = vmatprep.mubr.f32.mxu0 %v2678_v55  ;;  %2311 = vmatpush3.bf16.msra.mxu0 %v2308_v46  ;;  %v799_v46 = vld [vmem:[%s3180_s4 + $0x78] sm:$0xff] }
  0x46   :  { %2313 = vmatprep.subr.bf16.mxu0 %v2312_v57  ;;  %v2336_v52 = vpack.c.bf16 %v799_v46, %v798_v44 }
  0x48   :  { %1836 = vmatmul.mubr.f32.gmra.mrb[6].mxu0 %v2691_v59 }
  0x49   :  { %2315 = vmatpush3.bf16.msra.mxu0 %v2312_v57 }
  0xf7   :  { %v2738_v13 = vpop.f32.mrb[0].mxu0 }
  0xf8   :  { %v2740_v14 = vpop.f32.mrb[1].mxu0 }
  0xfa   :  { %v1796_v17 = vpop.f32.mrb[0].mxu1 }
  0xfb   :  { %v2742_v15 = vpop.f32.mrb[2].mxu0  ;;  %v229_v18 = vpop.f32.mrb[1].mxu1 }
  0xfc   :  { %v2744_v16 = vpop.f32.mrb[3].mxu0  ;;  %v2252_v19 = vpack.c.bf16 %v1796_v17, %v229_v18 }
  0xfe   :  { %v1799_v20 = vpop.f32.mrb[2].mxu1 }
  0xff   :  { %v239_v21 = vpop.f32.mrb[3].mxu1 }
 0x100   :  { %v2256_v22 = vpack.c.bf16 %v1799_v20, %v239_v21 }
 0x117   :  { %v1834_v23 = vpop.f32.mrb[4].mxu0 }
 0x118   :  { %v336_v24 = vpop.f32.mrb[5].mxu0 }
 0x119   :  { %v2244_v25 = vpack.c.bf16 %v1834_v23, %v336_v24 }
 0x11b   :  { %v1837_v26 = vpop.f32.mrb[6].mxu0  ;;  %2245 = vmatprep.subr.bf16.mxu1 %v2244_v25 }
 0x11c   :  { %v346_v27 = vpop.f32.mrb[7].mxu0  ;;  %2247 = vmatpush3.bf16.msra.mxu1 %v2244_v25 }
 0x11d   :  { %v2248_v28 = vpack.c.bf16 %v1837_v26, %v346_v27 }
 0x11f   :  { %2249 = vmatprep.subr.bf16.mxu1 %v2248_v28 }
 0x120   :  { %2251 = vmatpush3.bf16.msra.mxu1 %v2248_v28 }
 0x121   :  { %2253 = vmatprep.subr.bf16.mxu1 %v2252_v19 }
 0x123   :  { %1847 = vmatmul.mubr.msk.f32.vlgmr.msra.gmra.mrb[4].mxu1 %vm355_vm0, %v2749_v29 }
 0x124   :  { %2255 = vmatpush3.bf16.msra.mxu1 %v2252_v19  ;;  %1849 = vmatprep.mubr.msk.f32.mxu1 %vm355_vm0, %v2754_v30 }
 0x125   :  { %2257 = vmatprep.subr.bf16.mxu1 %v2256_v22 }
 0x127   :  { %1850 = vmatmul.mubr.msk.f32.gmra.mrb[6].mxu1 %vm355_vm0, %v2763_v31 }
 0x128   :  { %2259 = vmatpush3.bf16.msra.mxu1 %v2256_v22  ;;  %1860 = vmatprep.mubr.msk.f32.mxu1 %vm355_vm0, %v2768_v32 }
 0x129   :  { %2260 = vmatprep.subr.bf16.mxu1 %v2492_v38 }
 0x12b   :  { %1861 = vmatmul.mubr.msk.f32.vlgmr.msra.gmra.mrb[4].mxu1 %vm355_vm0, %v2783_v35 }
 0x12c   :  { %1863 = vmatprep.mubr.msk.f32.mxu1 %vm355_vm0, %v2790_v37  ;;  %2262 = vmatpush3.bf16.msra.mxu1 %v2785_v36 }
 0x12d   :  { %2263 = vmatprep.subr.bf16.mxu1 %v2492_v38 }
 0x12f   :  { %1864 = vmatmul.mubr.msk.f32.gmra.mrb[6].mxu1 %vm355_vm0, %v2806_v41 }
 0x130   :  { %2265 = vmatpush3.bf16.msra.mxu1 %v2809_v42  ;;  %1898 = vmatprep.mubr.msk.f32.mxu1 %vm2493_vm1, %v2494_v0 }
 0x131   :  { %2266 = vmatprep.subr.bf16.mxu1 %v2492_v38 }
 0x134   :  { %2268 = vmatpush3.bf16.msra.mxu1 %v2822_v45 }
 0x135   :  { %2269 = vmatprep.subr.bf16.mxu1 %v2492_v38 }
 0x138   :  { %2271 = vmatpush3.bf16.msra.mxu1 %v2832_v48 }
 0x139   :  { %2272 = vmatprep.subr.bf16.mxu1 %v2492_v38 }
 0x13c   :  { %2274 = vmatpush3.bf16.msra.mxu1 %v2842_v51 }
 0x13d   :  { %2275 = vmatprep.subr.bf16.mxu1 %v2492_v38 }
 0x140   :  { %2277 = vmatpush3.bf16.msra.mxu1 %v2852_v56 }
 0x141   :  { %2278 = vmatprep.subr.bf16.mxu1 %v2492_v38 }
 0x144   :  { %2280 = vmatpush3.bf16.msra.mxu1 %v2862_v60 }
 0x145   :  { %2281 = vmatprep.subr.bf16.mxu1 %v2492_v38 }
 0x148   :  { %2283 = vmatpush3.bf16.msra.mxu1 %v2872_v63 }
 0x149   :  { %2284 = vmatprep.subr.bf16.mxu1 %v2492_v38 }
 0x1fe   :  { %v1862_v1 = vpop.f32.mrb[4].mxu1 }
 0x1ff   :  { %v2879_v2 = vadd.f32 %v1862_v1, %v2738_v13  ;;  %v531_v3 = vpop.f32.mrb[5].mxu1  ;;  %v789_v1 = vld [vmem:[%s3180_s4 + $0x28] sm:$0xff] }
 0x200   :  { %v2882_v4 = vadd.f32 %v531_v3, %v2740_v14  ;;  %v1484_v3 = vld [vmem:[%s3180_s4 + $0xa0] sm:$0xff] }
 0x201   :  { %v564_v19 = vmul.f32 %v2879_v2, %v2879_v2 }
 0x202   :  { %v1865_v5 = vpop.f32.mrb[6].mxu1  ;;  %v554_v8 = vadd.f32 %v2882_v4, %v2879_v2 }
 0x203   :  { %v2885_v6 = vadd.f32 %v1865_v5, %v2742_v15  ;;  %v541_v7 = vpop.f32.mrb[7].mxu1  ;;  %v563_v15 = vmul.f32 %v2882_v4, %v2882_v4  ;;  %v2316_v5 = vpack.c.bf16 %v789_v1, %v788_v62 }
 0x204   :  { %v2890_v9 = vadd.f32 %v541_v7, %v2744_v16  ;;  %v1485_v7 = vld [vmem:[%s3180_s4 + $0xa8] sm:$0xff] }
 0x205   :  { %v567_v22 = vadd.f32 %v564_v19, %v563_v15  ;;  %v566_v24 = vmul.f32 %v2885_v6, %v2885_v6  ;;  %2317 = vmatprep.subr.bf16.mxu0 %v2316_v5  ;;  %v792_v19 = vld [vmem:[%s3180_s4 + $0x40] sm:$0xff]  ;;  %v793_v15 = vld [vmem:[%s3180_s4 + $0x48] sm:$0xff] }
 0x206   :  { %v555_v10 = vadd.f32 %v2890_v9, %v554_v8  ;;  %v565_v21 = vmul.f32 %v2890_v9, %v2890_v9  ;;  %v2348_v8 = vpack.c.bf16 %v1485_v7, %v1484_v3  ;;  %2319 = vmatpush3.bf16.msra.mxu0 %v2316_v5 }
 0x208   :  { %v556_v11 = vadd.f32 %v2885_v6, %v555_v10  ;;  %v568_v23 = vadd.f32 %v567_v22, %v565_v21  ;;  %v790_v10 = vld [vmem:[%s3180_s4 + $0x30] sm:$0xff]  ;;  %v2324_v21 = vpack.c.bf16 %v793_v15, %v792_v19  ;;  %v741_v15 = vld [vmem:[%s3182_s8] sm:$0x1] }
 0x20a   :  { %v557_v13 = vrot.slane %v556_v11, 4  ;;  %v569_v25 = vadd.f32 %v568_v23, %v566_v24  ;;  %v794_v23 = vld [vmem:[%s3180_s4 + $0x50] sm:$0xff]  ;;  %v795_v24 = vld [vmem:[%s3180_s4 + $0x58] sm:$0xff] }
 0x20c   :  { %v558_v17 = vadd.f32 %v557_v13, %v556_v11  ;;  %v570_v26 = vrot.slane %v569_v25, 4  ;;  %v791_v11 = vld [vmem:[%s3180_s4 + $0x38] sm:$0xff]  ;;  %v1486_v13 = vld [vmem:[%s3180_s4 + $0xb0] sm:$0xff] }
 0x20e   :  { %v559_v18 = vrot.slane %v558_v17, 2  ;;  %v571_v27 = vadd.f32 %v570_v26, %v569_v25  ;;  %v1490_v25 = vld [vmem:[%s3180_s4 + $0xd0] sm:$0xff]  ;;  %v2328_v26 = vpack.c.bf16 %v795_v24, %v794_v23 }
 0x210   :  { %v560_v14 = vadd.f32 %v559_v18, %v558_v17  ;;  %v572_v28 = vrot.slane %v571_v27, 2  ;;  %v2320_v17 = vpack.c.bf16 %v791_v11, %v790_v10  ;;  %v1487_v18 = vld [vmem:[%s3180_s4 + $0xb8] sm:$0xff]  ;;  %v745_v11 = vlaneseq }
 0x212   :  { %v561_v20 = vrot.slane %v560_v14, 1  ;;  %v573_v33 = vadd.f32 %v572_v28, %v571_v27  ;;  %2321 = vmatprep.subr.bf16.mxu0 %v2320_v17  ;;  %v1491_v27 = vld [vmem:[%s3180_s4 + $0xd8] sm:$0xff] }
 0x213   :  { %2323 = vmatpush3.bf16.msra.mxu0 %v2320_v17  ;;  %v2360_v28 = vpack.c.bf16 %v1491_v27, %v1490_v25  ;;  %v737_v17 = vld [vmem:[%s3181_s7] sm:$0x1] }
 0x214   :  { %v562_v16 = vadd.f32 %v561_v20, %v560_v14  ;;  %v574_v34 = vrot.slane %v573_v33, 1  ;;  %v2352_v14 = vpack.c.bf16 %v1487_v18, %v1486_v13  ;;  %v1488_v20 = vld [vmem:[%s3180_s4 + $0xc0] sm:$0xff]  ;;  %2325 = vmatprep.subr.bf16.mxu0 %v2324_v21  ;;  %v746_v13 = vshrl.u32 %v745_v11, 7  ;;  %v779_v11 = vld [vmem:[%s3183_s3 + $0x58] sm:$0xff] }
 0x216   :  { %1899 = vmatmul.mubr.f32.vlgmr.msra.gmra.mrb[8].mxu1 %v562_v16  ;;  %v575_v39 = vadd.f32 %v574_v34, %v573_v33  ;;  %v1489_v16 = vld [vmem:[%s3180_s4 + $0xc8] sm:$0xff]  ;;  %v796_v33 = vld [vmem:[%s3180_s4 + $0x60] sm:$0xff]  ;;  %v3019_v18 = vsub.s32 0, %v746_v13 }
 0x217   :  { %2286 = vmatpush3.bf16.msra.mxu1 %v2785_v36  ;;  %1933 = vmatprep.mubr.msk.f32.mxu1 %vm2493_vm1, %v2494_v0  ;;  %v2356_v22 = vpack.c.bf16 %v1489_v16, %v1488_v20  ;;  %v797_v34 = vld [vmem:[%s3180_s4 + $0x68] sm:$0xff] }
 0x218   :  { %2287 = vmatprep.subr.bf16.mxu1 %v2492_v38  ;;  %2327 = vmatpush3.bf16.msra.mxu0 %v2324_v21  ;;  %v2332_v40 = vpack.c.bf16 %v797_v34, %v796_v33 }
 0x219   :  { %2329 = vmatprep.subr.bf16.mxu0 %v2328_v26 }
 0x21b   :  { %2289 = vmatpush3.bf16.msra.mxu1 %v2809_v42 }
 0x21c   :  { %2290 = vmatprep.subr.bf16.mxu1 %v2492_v38  ;;  %2331 = vmatpush3.bf16.msra.mxu0 %v2328_v26 }
 0x21d   :  { %2333 = vmatprep.subr.bf16.mxu0 %v2332_v40 }
 0x21f   :  { %2292 = vmatpush3.bf16.msra.mxu1 %v2822_v45 }
 0x220   :  { %2293 = vmatprep.subr.bf16.mxu1 %v2492_v38  ;;  %2335 = vmatpush3.bf16.msra.mxu0 %v2332_v40 }
 0x221   :  { %2337 = vmatprep.subr.bf16.mxu0 %v2336_v52 }
 0x223   :  { %2295 = vmatpush3.bf16.msra.mxu1 %v2832_v48 }
 0x224   :  { %2296 = vmatprep.subr.bf16.mxu1 %v2492_v38  ;;  %2339 = vmatpush3.bf16.msra.mxu0 %v2336_v52 }
 0x227   :  { %2298 = vmatpush3.bf16.msra.mxu1 %v2842_v51 }
 0x228   :  { %2299 = vmatprep.subr.bf16.mxu1 %v2492_v38 }
 0x22b   :  { %2301 = vmatpush3.bf16.msra.mxu1 %v2852_v56 }
 0x22c   :  { %2302 = vmatprep.subr.bf16.mxu1 %v2492_v38 }
 0x22f   :  { %2304 = vmatpush3.bf16.msra.mxu1 %v2862_v60 }
 0x230   :  { %2305 = vmatprep.subr.bf16.mxu1 %v2492_v38 }
 0x233   :  { %2307 = vmatpush3.bf16.msra.mxu1 %v2872_v63 }
 0x234   :  { %2341 = vmatprep.subr.bf16.mxu1 %v2340_v49 }
 0x236   :  { %1934 = vmatmul.mubr.f32.vlgmr.msra.gmra.mrb[10].mxu1 %v575_v39  ;;  %v1492_v39 = vld [vmem:[%s3180_s4 + $0xe0] sm:$0xff] }
 0x237   :  { %2343 = vmatpush3.bf16.msra.mxu1 %v2340_v49  ;;  %v2364_v47 = vpack.c.bf16 %v1493_v43, %v1492_v39  ;;  %v1494_v49 = vld [vmem:[%s3180_s4 + $0xf0] sm:$0xff] }
 0x238   :  { %2345 = vmatprep.subr.bf16.mxu1 %v2344_v61  ;;  %v2368_v54 = vpack.c.bf16 %v1495_v50, %v1494_v49 }
 0x23b   :  { %2347 = vmatpush3.bf16.msra.mxu1 %v2344_v61 }
 0x23c   :  { %2349 = vmatprep.subr.bf16.mxu1 %v2348_v8 }
 0x23f   :  { %2351 = vmatpush3.bf16.msra.mxu1 %v2348_v8 }
 0x240   :  { %2353 = vmatprep.subr.bf16.mxu1 %v2352_v14 }
 0x243   :  { %2355 = vmatpush3.bf16.msra.mxu1 %v2352_v14 }
 0x244   :  { %2357 = vmatprep.subr.bf16.mxu1 %v2356_v22 }
 0x247   :  { %2359 = vmatpush3.bf16.msra.mxu1 %v2356_v22 }
 0x248   :  { %2361 = vmatprep.subr.bf16.mxu1 %v2360_v28 }
 0x24b   :  { %2363 = vmatpush3.bf16.msra.mxu1 %v2360_v28 }
 0x24c   :  { %2365 = vmatprep.subr.bf16.mxu1 %v2364_v47 }
 0x24f   :  { %2367 = vmatpush3.bf16.msra.mxu1 %v2364_v47 }
 0x250   :  { %2369 = vmatprep.subr.bf16.mxu1 %v2368_v54 }
 0x253   :  { %2371 = vmatpush3.bf16.msra.mxu1 %v2368_v54 }
 0x254   :  { %2420 = vmatprep.subr.bf16.mxu1 %v2492_v38 }
 0x2e9   :  { %v658_v57 = vpop.f32.mrb[8].mxu1 }
 0x2ea   :  { %v1900_v58 = vpop.f32.mrb[9].mxu1  ;;  %v662_v61 = vmul.f32 0.001953125, %v658_v57 }
 0x2eb   :  { %v768_v58 = vld [vmem:[%s3183_s3] sm:$0xff] }
 0x2ec   :  { %v734_v1 = vmul.f32 %v662_v61, %v662_v61 }
 0x309   :  { %v729_v62 = vpop.f32.mrb[10].mxu1 }
 0x30a   :  { %v733_v3 = vmul.f32 0.001953125, %v729_v62  ;;  %v1935_v5 = vpop.f32.mrb[11].mxu1 }
 0x30b   :  { %v773_v5 = vld [vmem:[%s3183_s3 + $0x28] sm:$0xff] }
 0x30c   :  { %v735_v7 = vsub.f32 %v733_v3, %v734_v1  ;;  %v770_v1 = vld [vmem:[%s3183_s3 + $0x10] sm:$0xff]  ;;  %v771_v3 = vld [vmem:[%s3183_s3 + $0x18] sm:$0xff] }
 0x30e   :  { %v736_v8 = vmax.f32 %v735_v7, 0.0  ;;  %v775_v7 = vld [vmem:[%s3183_s3 + $0x38] sm:$0xff] }
 0x310   :  { %v738_v10 = vadd.f32 1e-05, %v736_v8  ;;  %v777_v8 = vld [vmem:[%s3183_s3 + $0x48] sm:$0xff] }
 0x312   :  { %2487 = vrsqrt.f32 %v738_v10 }
 0x31c   :  { %v2488_v14 = vpop.eup %2487 }
 0x31d   :  { %v740_v19 = vmul.f32 %v2488_v14, %v737_v17  ;;  %v780_v17 = vld [vmem:[%s3183_s3 + $0x60] sm:$0xff]  ;;  %v781_v14 = vld [vmem:[%s3183_s3 + $0x68] sm:$0xff] }
 0x31f   :  { %v742_v20 = vmul.f32 %v740_v19, %v662_v61  ;;  %v748_v21 = vrot.slane %v740_v19, %v3019_v18  ;;  %v769_v61 = vld [vmem:[%s3183_s3 + $0x8] sm:$0xff]  ;;  %v2412_v19 = vpack.c.bf16 %v781_v14, %v780_v17 }
 0x320   :  { %v2388_v62 = vpack.c.bf16 %v769_v61, %v768_v58  ;;  %v1409_v58 = vld [vmem:[%s3184_s9] sm:$0x1] }
 0x321   :  { %v743_v16 = vsub.f32 %v741_v15, %v742_v20  ;;  %v750_v22 = vmul.f32 %v2882_v4, %v748_v21  ;;  %v751_v24 = vmul.f32 %v2879_v2, %v748_v21  ;;  %v752_v25 = vmul.f32 %v2890_v9, %v748_v21  ;;  %v782_v15 = vld [vmem:[%s3183_s3 + $0x70] sm:$0xff]  ;;  %v783_v20 = vld [vmem:[%s3183_s3 + $0x78] sm:$0xff] }
 0x322   :  { %v753_v26 = vmul.f32 %v2885_v6, %v748_v21  ;;  %v2416_v21 = vpack.c.bf16 %v783_v20, %v782_v15 }
 0x323   :  { %v758_v23 = vrot.slane %v743_v16, %v3019_v18 }
 0x325   :  { %v760_v27 = vadd.f32 %v758_v23, %v750_v22  ;;  %v761_v28 = vadd.f32 %v758_v23, %v751_v24  ;;  %v762_v33 = vadd.f32 %v758_v23, %v752_v25  ;;  %v763_v34 = vadd.f32 %v758_v23, %v753_v26 }
 0x327   :  { %v3030_v39 = vmax.f32 %v760_v27, 0.0  ;;  %v3032_v40 = vmax.f32 %v761_v28, 0.0  ;;  %v3036_v4 = vmax.f32 %v762_v33, 0.0  ;;  %v3042_v2 = vmax.f32 %v763_v34, 0.0 }
 0x329   :  { %1968 = vmatprep.mubr.f32.mxu0 %v3030_v39  ;;  %2006 = vmatprep.mubr.f32.mxu1 %v3030_v39 }
 0x32a   :  { %1969 = vmatmul.mubr.f32.vlgmr.msra.gmra.mrb[8].mxu0 %v3032_v40  ;;  %2007 = vmatmul.mubr.f32.vlgmr.msra.gmra.mrb[12].mxu1 %v3032_v40 }
 0x32b   :  { %1971 = vmatprep.mubr.f32.mxu0 %v3036_v4  ;;  %2009 = vmatprep.mubr.f32.mxu1 %v3036_v4 }
 0x32c   :  { %2422 = vmatpush3.bf16.msra.mxu1 %v2785_v36 }
 0x32d   :  { %2423 = vmatprep.subr.bf16.mxu1 %v2492_v38 }
 0x32e   :  { %1972 = vmatmul.mubr.f32.gmra.mrb[10].mxu0 %v3042_v2  ;;  %2010 = vmatmul.mubr.f32.gmra.mrb[14].mxu1 %v3042_v2 }
 0x32f   :  { %2020 = vmatprep.mubr.msk.f32.mxu0 %vm355_vm0, %v2734_v12  ;;  %2110 = vmatprep.mubr.msk.f32.mxu1 %vm2493_vm1, %v2494_v0 }
 0x330   :  { %2425 = vmatpush3.bf16.msra.mxu1 %v2809_v42 }
 0x331   :  { %2426 = vmatprep.subr.bf16.mxu1 %v2492_v38 }
 0x334   :  { %2428 = vmatpush3.bf16.msra.mxu1 %v2822_v45 }
 0x335   :  { %2429 = vmatprep.subr.bf16.mxu1 %v2492_v38 }
 0x338   :  { %2431 = vmatpush3.bf16.msra.mxu1 %v2832_v48 }
 0x339   :  { %2432 = vmatprep.subr.bf16.mxu1 %v2492_v38 }
 0x33c   :  { %2434 = vmatpush3.bf16.msra.mxu1 %v2842_v51 }
 0x33d   :  { %2435 = vmatprep.subr.bf16.mxu1 %v2492_v38 }
 0x340   :  { %2437 = vmatpush3.bf16.msra.mxu1 %v2852_v56 }
 0x341   :  { %2438 = vmatprep.subr.bf16.mxu1 %v2492_v38 }
 0x344   :  { %2440 = vmatpush3.bf16.msra.mxu1 %v2862_v60 }
 0x345   :  { %2441 = vmatprep.subr.bf16.mxu1 %v2492_v38 }
 0x348   :  { %2443 = vmatpush3.bf16.msra.mxu1 %v2872_v63 }
 0x3fd   :  { %v1970_v12 = vpop.f32.mrb[8].mxu0  ;;  %v2008_v6 = vpop.f32.mrb[12].mxu1 }
 0x3fe   :  { %v866_v9 = vpop.f32.mrb[9].mxu0  ;;  %v968_v43 = vpop.f32.mrb[13].mxu1 }
 0x3ff   :  { %v2380_v44 = vpack.c.bf16 %v1970_v12, %v866_v9  ;;  %v2372_v46 = vpack.c.bf16 %v2008_v6, %v968_v43 }
 0x401   :  { %v1973_v47 = vpop.f32.mrb[10].mxu0  ;;  %v2011_v49 = vpop.f32.mrb[14].mxu1  ;;  %2373 = vmatprep.subr.bf16.mxu0 %v2372_v46 }
 0x402   :  { %v876_v50 = vpop.f32.mrb[11].mxu0  ;;  %v978_v52 = vpop.f32.mrb[15].mxu1  ;;  %2375 = vmatpush3.bf16.msra.mxu0 %v2372_v46 }
 0x403   :  { %v2384_v54 = vpack.c.bf16 %v1973_v47, %v876_v50  ;;  %v2376_v57 = vpack.c.bf16 %v2011_v49, %v978_v52 }
 0x405   :  { %2377 = vmatprep.subr.bf16.mxu0 %v2376_v57 }
 0x406   :  { %2379 = vmatpush3.bf16.msra.mxu0 %v2376_v57 }
 0x407   :  { %2381 = vmatprep.subr.bf16.mxu0 %v2380_v44 }
 0x409   :  { %2021 = vmatmul.mubr.msk.f32.vlgmr.msra.gmra.mrb[12].mxu0 %vm355_vm0, %v2749_v29  ;;  %v2392_v29 = vpack.c.bf16 %v771_v3, %v770_v1  ;;  %v1413_v1 = vld [vmem:[%s3185_s10] sm:$0x1] }
 0x40a   :  { %2383 = vmatpush3.bf16.msra.mxu0 %v2380_v44  ;;  %2023 = vmatprep.mubr.msk.f32.mxu0 %vm355_vm0, %v2754_v30  ;;  %v772_v30 = vld [vmem:[%s3183_s3 + $0x20] sm:$0xff] }
 0x40b   :  { %2385 = vmatprep.subr.bf16.mxu0 %v2384_v54 }
 0x40d   :  { %2024 = vmatmul.mubr.msk.f32.gmra.mrb[14].mxu0 %vm355_vm0, %v2763_v31  ;;  %v2396_v31 = vpack.c.bf16 %v773_v5, %v772_v30 }
 0x40e   :  { %2387 = vmatpush3.bf16.msra.mxu0 %v2384_v54  ;;  %2034 = vmatprep.mubr.msk.f32.mxu0 %vm355_vm0, %v2768_v32  ;;  %v774_v32 = vld [vmem:[%s3183_s3 + $0x30] sm:$0xff] }
 0x40f   :  { %2389 = vmatprep.subr.bf16.mxu0 %v2388_v62 }
 0x411   :  { %2035 = vmatmul.mubr.msk.f32.vlgmr.msra.gmra.mrb[12].mxu0 %vm355_vm0, %v2783_v35  ;;  %v2400_v35 = vpack.c.bf16 %v775_v7, %v774_v32 }
 0x412   :  { %2391 = vmatpush3.bf16.msra.mxu0 %v2388_v62  ;;  %2037 = vmatprep.mubr.msk.f32.mxu0 %vm355_vm0, %v2790_v37  ;;  %v776_v37 = vld [vmem:[%s3183_s3 + $0x40] sm:$0xff] }
 0x413   :  { %2393 = vmatprep.subr.bf16.mxu0 %v2392_v29  ;;  %v2404_v10 = vpack.c.bf16 %v777_v8, %v776_v37 }
 0x415   :  { %2038 = vmatmul.mubr.msk.f32.gmra.mrb[14].mxu0 %vm355_vm0, %v2806_v41  ;;  %v778_v41 = vld [vmem:[%s3183_s3 + $0x50] sm:$0xff] }
 0x416   :  { %2395 = vmatpush3.bf16.msra.mxu0 %v2392_v29  ;;  %2072 = vmatprep.mubr.f32.mxu0 %v3030_v39  ;;  %v2408_v13 = vpack.c.bf16 %v779_v11, %v778_v41  ;;  %v2491_v11 = vld [vmem:[%s3176_s0] sm:$0xff] }
 0x417   :  { %2397 = vmatprep.subr.bf16.mxu0 %v2396_v31 }
 0x41a   :  { %2399 = vmatpush3.bf16.msra.mxu0 %v2396_v31 }
 0x41b   :  { %2401 = vmatprep.subr.bf16.mxu0 %v2400_v35 }
 0x41e   :  { %2403 = vmatpush3.bf16.msra.mxu0 %v2400_v35 }
 0x41f   :  { %2405 = vmatprep.subr.bf16.mxu0 %v2404_v10 }
 0x422   :  { %2407 = vmatpush3.bf16.msra.mxu0 %v2404_v10 }
 0x423   :  { %2409 = vmatprep.subr.bf16.mxu0 %v2408_v13 }
 0x426   :  { %2411 = vmatpush3.bf16.msra.mxu0 %v2408_v13 }
 0x427   :  { %2413 = vmatprep.subr.bf16.mxu0 %v2412_v19 }
 0x42a   :  { %2415 = vmatpush3.bf16.msra.mxu0 %v2412_v19 }
 0x42b   :  { %2417 = vmatprep.subr.bf16.mxu0 %v2416_v21 }
 0x42e   :  { %2419 = vmatpush3.bf16.msra.mxu0 %v2416_v21 }
 0x42f   :  { %2444 = vmatprep.subr.bf16.mxu0 %v2492_v38 }
 0x431   :  { %2073 = vmatmul.mubr.f32.vlgmr.msra.gmra.mrb[12].mxu0 %v3032_v40 }
 0x432   :  { %2075 = vmatprep.mubr.f32.mxu0 %v3036_v4  ;;  %2446 = vmatpush3.bf16.msra.mxu0 %v2785_v36 }
 0x433   :  { %2447 = vmatprep.subr.bf16.mxu0 %v2492_v38 }
 0x435   :  { %2076 = vmatmul.mubr.f32.gmra.mrb[14].mxu0 %v3042_v2 }
 0x436   :  { %2449 = vmatpush3.bf16.msra.mxu0 %v2809_v42  ;;  %2145 = vmatprep.mubr.msk.f32.mxu0 %vm2493_vm1, %v2494_v0 }
 0x437   :  { %2450 = vmatprep.subr.bf16.mxu0 %v2492_v38 }
 0x43a   :  { %2452 = vmatpush3.bf16.msra.mxu0 %v2822_v45 }
 0x43b   :  { %2453 = vmatprep.subr.bf16.mxu0 %v2492_v38 }
 0x43e   :  { %2455 = vmatpush3.bf16.msra.mxu0 %v2832_v48 }
 0x43f   :  { %2456 = vmatprep.subr.bf16.mxu0 %v2492_v38 }
 0x442   :  { %2458 = vmatpush3.bf16.msra.mxu0 %v2842_v51 }
 0x443   :  { %2459 = vmatprep.subr.bf16.mxu0 %v2492_v38 }
 0x446   :  { %2461 = vmatpush3.bf16.msra.mxu0 %v2852_v56 }
 0x447   :  { %2462 = vmatprep.subr.bf16.mxu0 %v2492_v38 }
 0x44a   :  { %2464 = vmatpush3.bf16.msra.mxu0 %v2862_v60 }
 0x44b   :  { %2465 = vmatprep.subr.bf16.mxu0 %v2492_v38 }
 0x44e   :  { %2467 = vmatpush3.bf16.msra.mxu0 %v2872_v63 }
 0x504   :  { %v2074_v36 = vpop.f32.mrb[12].mxu0 }
 0x505   :  { %v1252_v42 = vmul.f32 %v2074_v36, %v2074_v36  ;;  %v1223_v45 = vpop.f32.mrb[13].mxu0 }
 0x506   :  { %v1242_v48 = vadd.f32 %v2074_v36, %v1223_v45  ;;  %v1251_v0 = vmul.f32 %v1223_v45, %v1223_v45 }
 0x508   :  { %v1255_v16 = vadd.f32 %v1252_v42, %v1251_v0  ;;  %v2077_v22 = vpop.f32.mrb[14].mxu0 }
 0x509   :  { %v1233_v51 = vpop.f32.mrb[15].mxu0  ;;  %v1254_v25 = vmul.f32 %v2077_v22, %v2077_v22 }
 0x50a   :  { %v1243_v23 = vadd.f32 %v1242_v48, %v1233_v51  ;;  %v1253_v24 = vmul.f32 %v1233_v51, %v1233_v51 }
 0x50c   :  { %v1244_v56 = vadd.f32 %v2077_v22, %v1243_v23  ;;  %v1256_v26 = vadd.f32 %v1255_v16, %v1253_v24 }
 0x50e   :  { %v1245_v27 = vrot.slane %v1244_v56, 4  ;;  %v1257_v28 = vadd.f32 %v1256_v26, %v1254_v25 }
 0x510   :  { %v1246_v60 = vadd.f32 %v1245_v27, %v1244_v56  ;;  %v1258_v33 = vrot.slane %v1257_v28, 4 }
 0x512   :  { %v1247_v38 = vrot.slane %v1246_v60, 2  ;;  %v1259_v34 = vadd.f32 %v1258_v33, %v1257_v28 }
 0x514   :  { %v1248_v63 = vadd.f32 %v1247_v38, %v1246_v60  ;;  %v1260_v39 = vrot.slane %v1259_v34, 2 }
 0x516   :  { %v1249_v40 = vrot.slane %v1248_v63, 1  ;;  %v1261_v4 = vadd.f32 %v1260_v39, %v1259_v34 }
 0x518   :  { %v1250_v2 = vadd.f32 %v1249_v40, %v1248_v63  ;;  %v1262_v12 = vrot.slane %v1261_v4, 1 }
 0x51a   :  { %2111 = vmatmul.mubr.f32.vlgmr.msra.gmra.mrb[16].mxu1 %v1250_v2  ;;  %v1263_v6 = vadd.f32 %v1262_v12, %v1261_v4 }
 0x51c   :  { %2146 = vmatmul.mubr.f32.vlgmr.msra.gmra.mrb[16].mxu0 %v1263_v6 }
 0x5ed   :  { %v1330_v9 = vpop.f32.mrb[16].mxu1 }
 0x5ee   :  { %v1334_v43 = vmul.f32 0.001953125, %v1330_v9  ;;  %v2112_v44 = vpop.f32.mrb[17].mxu1 }
 0x5ef   :  { %v1401_v46 = vpop.f32.mrb[16].mxu0 }
 0x5f0   :  { %v1406_v47 = vmul.f32 %v1334_v43, %v1334_v43  ;;  %v1405_v49 = vmul.f32 0.001953125, %v1401_v46  ;;  %v2147_v50 = vpop.f32.mrb[17].mxu0 }
 0x5f2   :  { %v1407_v52 = vsub.f32 %v1405_v49, %v1406_v47 }
 0x5f4   :  { %v1408_v54 = vmax.f32 %v1407_v52, 0.0 }
 0x5f6   :  { %v1410_v57 = vadd.f32 1e-05, %v1408_v54 }
 0x5f8   :  { %2489 = vrsqrt.f32 %v1410_v57 }
 0x602   :  { %v2490_v61 = vpop.eup %2489 }
 0x603   :  { %v1412_v62 = vmul.f32 %v2490_v61, %v1409_v58 }
 0x605   :  { %v1414_v3 = vmul.f32 %v1412_v62, %v1334_v43  ;;  %v1420_v29 = vrot.slane %v1412_v62, %v3019_v18 }
 0x607   :  { %v1415_v30 = vsub.f32 %v1413_v1, %v1414_v3  ;;  %v1422_v5 = vmul.f32 %v1420_v29, %v1223_v45  ;;  %v1423_v31 = vmul.f32 %v2074_v36, %v1420_v29  ;;  %v1424_v32 = vmul.f32 %v1420_v29, %v1233_v51 }
 0x608   :  { %v1425_v7 = vmul.f32 %v2077_v22, %v1420_v29 }
 0x609   :  { %v1430_v35 = vrot.slane %v1415_v30, %v3019_v18 }
 0x60b   :  { %v1432_v37 = vadd.f32 %v1430_v35, %v1422_v5  ;;  %v1433_v8 = vadd.f32 %v1430_v35, %v1423_v31  ;;  %v1434_v10 = vadd.f32 %v1430_v35, %v1424_v32  ;;  %v1435_v41 = vadd.f32 %v1430_v35, %v1425_v7 }
 0x60d   :  { %v1436_v13 = vadd.f32 %v2491_v11, %v1432_v37  ;;  %v1437_v17 = vadd.f32 %v1433_v8, %v2673_v53  ;;  %v1438_v14 = vadd.f32 %v1434_v10, %v2678_v55  ;;  %v1439_v19 = vadd.f32 %v1435_v41, %v2691_v59 }
 0x60f   :  { %v1440_v15 = vmax.f32 %v1436_v13, 0.0  ;;  %v1441_v20 = vmax.f32 %v1437_v17, 0.0  ;;  %v1442_v21 = vmax.f32 %v1438_v14, 0.0  ;;  %v1443_v36 = vmax.f32 %v1439_v19, 0.0 }
 0x611   :  { %1444 = vst [vmem:[%s3186_s11] sm:$0xff] %v1440_v15  ;;  %1445 = vst [vmem:[%s3186_s11 + $0x8] sm:$0xff] %v1441_v20 }
 0x612   :  { %1446 = vst [vmem:[%s3186_s11 + $0x10] sm:$0xff] %v1442_v21  ;;  %1447 = vst [vmem:[%s3186_s11 + $0x18] sm:$0xff] %v1443_v36 }

</bundles_post_ra>
